<compile_context>
chip_gen: v5e
topology: v5e:2x2
jax: 0.10.0
libtpu: 0.0.40
codegen_flags: <defaults>
</compile_context>

<pallas_src>
import functools

import jax
import jax.numpy as jnp
import numpy as np
from jax import lax
from jax.experimental import pallas as pl
from jax.experimental.pallas import tpu as pltpu

EXPECT_DIV = 25.0813            # magic constant from the reference forward
INV_EXPECT = 1.0 / EXPECT_DIV   # fold the divide into a multiply


def _gaussian_smoothing_weights(channels=17, kernel_size=11, sigma=6.0):
    """Deterministic weights of the GaussianSmoothing module created in __init__.

    NOTE: the module constructs GaussianSmoothing(17, 11, 6) but never applies
    it inside forward(), so these weights are built for fidelity but not used.
    """
    ax = jnp.arange(kernel_size, dtype=jnp.float32)
    mean = (kernel_size - 1) / 2.0
    g = jnp.exp(-((ax - mean) ** 2) / (2.0 * sigma ** 2))
    k2d = jnp.outer(g, g)
    k2d = k2d / jnp.sum(k2d)
    # depthwise conv weight shape: (channels, 1, k, k)
    return jnp.broadcast_to(k2d, (channels, 1, kernel_size, kernel_size))


def _loss_kernel(hm_ref, gt_ref, w_ref, out_ref, *, width, inv_bj):
    """Single-invocation kernel over all (batch, joint) rows.

    hm_ref : (B*J, H*W) f32  predicted heatmaps (row = one (batch, joint) pair)
    gt_ref : (B*J, 2)   f32  ground-truth (x, y)
    w_ref  : (B*J, 1)   f32  per-(sample, joint) weight
    out_ref: (1, 1)     f32  scalar loss
    """
    hm = jnp.maximum(hm_ref[...], 1e-10)                         # .clamp(min=1e-10)
    # Linear pixel-index grid, generated once for the whole slab.
    locs = lax.broadcasted_iota(jnp.int32, hm.shape, 1).astype(jnp.float32)
    # E[pred] per row: sum(hm * locs) / 25.0813 (divide folded into a multiply).
    expected = jnp.sum(hm * locs, axis=1, keepdims=True) * INV_EXPECT  # (BJ, 1)

    gt = gt_ref[...]                                             # (BJ, 2)
    linear_gt = width * gt[:, 1:2] + gt[:, 0:1]                  # width*y + x -> (BJ, 1)

    w = w_ref[...]                                               # (BJ, 1)
    diff = jnp.abs(expected * w - linear_gt * w)                 # (BJ, 1)

    # Per-joint L1Loss(mean over B) summed over joints, then / J
    #   == sum(diff) / (B * J)   -> single final store, scale by 1/(B*J).
    out_ref[...] = jnp.sum(diff, keepdims=True) * inv_bj


def joints_expectation_loss(output, target_joint, target_weight):
    """output: (B, J, H, W); target_joint: (B, J, 2); target_weight: (B, J, 1)."""
    B, J, H, W = output.shape
    BJ, HW = B * J, H * W

    # Layout-preserving (free) reshapes — no transpose / extra HBM pass.
    hm = output.reshape(BJ, HW).astype(jnp.float32)       # (B*J, H*W)
    gt = target_joint.reshape(BJ, 2).astype(jnp.float32)  # (B*J, 2)
    tw = target_weight.reshape(BJ, 1).astype(jnp.float32) # (B*J, 1)

    kernel = functools.partial(_loss_kernel, width=float(W), inv_bj=1.0 / (B * J))
    out = pl.pallas_call(
        kernel,
        out_shape=jax.ShapeDtypeStruct((1, 1), jnp.float32),
        # No grid: one invocation, full arrays resident in VMEM (~35 KB total,
        # far below even v7x's 64 MiB VMEM).
        in_specs=[
            pl.BlockSpec(memory_space=pltpu.MemorySpace.VMEM),
            pl.BlockSpec(memory_space=pltpu.MemorySpace.VMEM),
            pl.BlockSpec(memory_space=pltpu.MemorySpace.VMEM),
        ],
        out_specs=pl.BlockSpec(memory_space=pltpu.MemorySpace.VMEM),
    )(hm, gt, tw)
    return out[0, 0]


def reference_loss(output, target_joint, target_weight):
    """Pure-JAX mirror of the PyTorch forward (for validation)."""
    B, J, H, W = output.shape
    hm = jnp.maximum(output.reshape(B, J, H * W).astype(jnp.float32), 1e-10)
    locs = jnp.arange(H * W, dtype=jnp.float32)
    expected = jnp.sum(hm * locs, axis=2) / EXPECT_DIV                  # (B, J)
    linear_gt = W * target_joint[:, :, 1] + target_joint[:, :, 0]       # (B, J)
    w = target_weight[:, :, 0]
    diff = jnp.abs(expected * w - linear_gt * w)
    # mean over B per joint, sum over J, / J  == mean over (B, J)
    return jnp.mean(diff)


if __name__ == "__main__":
    B, J, H, W = 2, 17, 16, 16

    # Deterministic, unused (see NOTE above) GaussianSmoothing parameters.
    _gauss_w = _gaussian_smoothing_weights(channels=17, kernel_size=11, sigma=6.0)

    key = jax.random.PRNGKey(0)
    k1, k2, k3 = jax.random.split(key, 3)
    output = jax.random.uniform(k1, (B, J, H, W), dtype=jnp.float32)
    target_joint = jax.random.uniform(
        k2, (B, J, 2), dtype=jnp.float32, minval=0.0, maxval=float(W - 1)
    )
    target_weight = jax.random.uniform(k3, (B, J, 1), dtype=jnp.float32)

    loss = joints_expectation_loss(output, target_joint, target_weight)
    loss = jax.block_until_ready(loss)

    ref = jax.block_until_ready(reference_loss(output, target_joint, target_weight))
    np.testing.assert_allclose(np.asarray(loss), np.asarray(ref), rtol=1e-4, atol=1e-4)

    print("KERNEL_OK")
</pallas_src>

<mosaic_0001>
module attributes {stable_mosaic.version = 11 : i64} {
  func.func @_loss_kernel(%arg0: memref<34x256xf32, #tpu.memory_space<vmem>>, %arg1: memref<34x2xf32, #tpu.memory_space<vmem>>, %arg2: memref<34x1xf32, #tpu.memory_space<vmem>>, %arg3: memref<1x1xf32, #tpu.memory_space<vmem>>) attributes {dimension_semantics = [], scalar_prefetch = 0 : i64, scratch_operands = 0 : i64, tpu.core_type = #tpu.core_type<tc>} {
    %c0 = arith.constant 0 : index
    %c0_0 = arith.constant 0 : index
    %0 = vector.load %arg0[%c0, %c0_0] : memref<34x256xf32, #tpu.memory_space<vmem>>, vector<34x256xf32>
    %cst = arith.constant 1.000000e-10 : f32
    %1 = vector.broadcast %cst : f32 to vector<34x256xf32>
    %2 = arith.maximumf %0, %1 : vector<34x256xf32>
    %3 = tpu.iota {dimensions = array<i32: 1>} : vector<34x256xi32>
    %4 = arith.sitofp %3 : vector<34x256xi32> to vector<34x256xf32>
    %5 = arith.mulf %2, %4 : vector<34x256xf32>
    %cst_1 = arith.constant dense<0.000000e+00> : vector<34xf32>
    %6 = vector.multi_reduction <add>, %5, %cst_1 [1] : vector<34x256xf32> to vector<34xf32>
    %7 = vector.shape_cast %6 : vector<34xf32> to vector<34x1xf32>
    %cst_2 = arith.constant 0.0398703404 : f32
    %8 = vector.broadcast %cst_2 : f32 to vector<34x1xf32>
    %9 = arith.mulf %7, %8 : vector<34x1xf32>
    %c0_3 = arith.constant 0 : index
    %c0_4 = arith.constant 0 : index
    %10 = vector.load %arg1[%c0_3, %c0_4] : memref<34x2xf32, #tpu.memory_space<vmem>>, vector<34x2xf32>
    %11 = vector.extract_strided_slice %10 {offsets = [0, 1], sizes = [34, 1], strides = [1, 1]} : vector<34x2xf32> to vector<34x1xf32>
    %cst_5 = arith.constant 1.600000e+01 : f32
    %12 = vector.broadcast %cst_5 : f32 to vector<34x1xf32>
    %13 = arith.mulf %12, %11 : vector<34x1xf32>
    %14 = vector.extract_strided_slice %10 {offsets = [0, 0], sizes = [34, 1], strides = [1, 1]} : vector<34x2xf32> to vector<34x1xf32>
    %15 = arith.addf %13, %14 : vector<34x1xf32>
    %c0_6 = arith.constant 0 : index
    %c0_7 = arith.constant 0 : index
    %16 = vector.load %arg2[%c0_6, %c0_7] : memref<34x1xf32, #tpu.memory_space<vmem>>, vector<34x1xf32>
    %17 = arith.mulf %9, %16 : vector<34x1xf32>
    %18 = arith.mulf %15, %16 : vector<34x1xf32>
    %19 = arith.subf %17, %18 : vector<34x1xf32>
    %20 = math.absf %19 : vector<34x1xf32>
    %21 = vector.shape_cast %20 : vector<34x1xf32> to vector<1x34x1xf32>
    %cst_8 = arith.constant dense<0.000000e+00> : vector<1xf32>
    %22 = vector.multi_reduction <add>, %21, %cst_8 [1, 2] : vector<1x34x1xf32> to vector<1xf32>
    %23 = vector.shape_cast %22 : vector<1xf32> to vector<1x1x1xf32>
    %24 = vector.extract %23[0, 0, 0] : f32 from vector<1x1x1xf32>
    %25 = vector.broadcast %24 : f32 to vector<1x1xf32>
    %cst_9 = arith.constant 0.0294117648 : f32
    %26 = vector.broadcast %cst_9 : f32 to vector<1x1xf32>
    %27 = arith.mulf %25, %26 : vector<1x1xf32>
    %c0_10 = arith.constant 0 : index
    %c0_11 = arith.constant 0 : index
    %28 = vector.load %arg3[%c0_10, %c0_11] : memref<1x1xf32, #tpu.memory_space<vmem>>, vector<1x1xf32>
    tpu.vector_store %arg3[%c0_10, %c0_11], %27 {strides = array<i32>} : memref<1x1xf32, #tpu.memory_space<vmem>>, vector<1x1xf32>,
    return
  }
}

</mosaic_0001>

<bundles_post_ra>
// kernel: tpu_custom_call.1
= control target key start
LH: loop header
LB: loop body
LE: loop exit
PB: predicated region body
PF: predicated region fallthrough
CT: control target
= control target key end

     0   :  { %s244_s16 = smov 1   ;;  %s370_s0 = inlined_call_operand.vmem [shape: f32[34,256], index: 0, kind: input, shape index: {}]   ;;  %s371_s1 = inlined_call_operand.vmem [shape: f32[34,2], index: 1, kind: input, shape index: {}]   ;;  %s372_s2 = inlined_call_operand.vmem [shape: f32[34,1], index: 2, kind: input, shape index: {}]   ;;  %s373_s3 = inlined_call_operand.hbm [shape: f32[1,1], index: 3, kind: output, shape index: {}]  }
   0x1   :  { %v270_v0 = vld [vmem:[%s371_s1 + $0x10] sm:$0xff]  ;;  %v275_v1 = vld [vmem:[%s371_s1] sm:$0xff]  ;;  %v282_v2 = vld [vmem:[%s372_s2 + $0x8] sm:$0xff] }
   0x2   :  { %92 = vrot.lane.b32.xlu1 %v270_v0, %s244_s16  ;;  %88 = vrot.lane.b32.xlu0 %v275_v1, %s244_s16 }
   0x3   :  { %125 = vrot.lane.b32.xlu2 %v282_v2, %s244_s16 }
   0x4   :  { %8 = vsyncpa [#allocation3], 0  ;;  %v288_v3 = vld [vmem:[%s372_s2] sm:$0xff]  ;;  %v293_v4 = vld [vmem:[%s371_s1 + $0x8] sm:$0xff]  ;;  %v35_v10 = vlaneseq  ;;  %vm62_vm0 = vcmask 1041408   ;;  %v78_v55 = vmul.f32 16.0, %v275_v1 }
   0x5   :  { %v298_v5 = vld [vmem:[%s371_s1 + $0x18] sm:$0xff]  ;;  %v306_v6 = vld [vmem:[%s372_s2 + $0x10] sm:$0xff]  ;;  %v311_v7 = vld [vmem:[%s371_s1 + $0x20] sm:$0x3]  ;;  %v79_v57 = vmul.f32 16.0, %v293_v4  ;;  %vm173_vm1 = vcmask 7168  }
   0x6   :  { %v316_v8 = vld [vmem:[%s372_s2 + $0x18] sm:$0xff]  ;;  %v324_v9 = vld [vmem:[%s372_s2 + $0x20] sm:$0x3]  ;;  %v36_v11 = vand.u32 127, %v35_v10  ;;  %v16_v14 = vld [vmem:[%s370_s0 + $0x8] sm:$0xff]  ;;  %v81_v61 = vmul.f32 16.0, %v298_v5 }
   0x7   :  { %v15_v13 = vld [vmem:[%s370_s0] sm:$0xff]  ;;  %v17_v15 = vld [vmem:[%s370_s0 + $0x10] sm:$0xff]  ;;  %v18_v16 = vld [vmem:[%s370_s0 + $0x18] sm:$0xff]  ;;  %v26_v18 = vmax.f32 %v16_v14, 1e-10  ;;  %v80_v10 = vmul.f32 16.0, %v270_v0 }
   0x8   :  { %v37_v12 = vadd.s32 128, %v36_v11  ;;  %v25_v17 = vmax.f32 %v15_v13, 1e-10  ;;  %v27_v19 = vmax.f32 %v17_v15, 1e-10  ;;  %v38_v21 = vcvt.s32.f32 %v36_v11  ;;  %v19_v27 = vld [vmem:[%s370_s0 + $0x20] sm:$0xff] }
   0x9   :  { %v28_v20 = vmax.f32 %v18_v16, 1e-10  ;;  %v20_v28 = vld [vmem:[%s370_s0 + $0x28] sm:$0xff]  ;;  %v21_v29 = vld [vmem:[%s370_s0 + $0x30] sm:$0xff]  ;;  %v22_v30 = vld [vmem:[%s370_s0 + $0x38] sm:$0xff]  ;;  %vm181_vm2 = vcmask 1024  }
   0xa   :  { %123 = vrot.lane.b32.xlu1 %v288_v3, %s244_s16  ;;  %90 = vrot.lane.b32.xlu0 %v293_v4, %s244_s16  ;;  %v39_v22 = vcvt.s32.f32 %v37_v12  ;;  %v40_v23 = vmul.f32 %v38_v21, %v25_v17  ;;  %v42_v25 = vmul.f32 %v38_v21, %v27_v19  ;;  %v29_v32 = vmax.f32 %v19_v27, 1e-10  ;;  %v23_v41 = vld [vmem:[%s370_s0 + $0x40] sm:$0x3]  ;;  %v24_v42 = vld [vmem:[%s370_s0 + $0x48] sm:$0x3] }
   0xb   :  { %94 = vrot.lane.b32.xlu2 %v298_v5, %s244_s16  ;;  %v30_v33 = vmax.f32 %v20_v28, 1e-10  ;;  %v31_v35 = vmax.f32 %v21_v29, 1e-10  ;;  %v32_v36 = vmax.f32 %v22_v30, 1e-10 }
   0xc   :  { %v41_v24 = vmul.f32 %v39_v22, %v26_v18  ;;  %v43_v26 = vmul.f32 %v39_v22, %v28_v20  ;;  %v44_v37 = vmul.f32 %v38_v21, %v29_v32  ;;  %v33_v43 = vmax.f32 %v23_v41, 1e-10  ;;  %s245_s0 = smov 127   ;;  %s246_s24 = smov [#allocation2]  }
   0xd   :  { %v45_v38 = vmul.f32 %v39_v22, %v30_v33  ;;  %v46_v39 = vmul.f32 %v38_v21, %v31_v35  ;;  %v47_v40 = vmul.f32 %v39_v22, %v32_v36  ;;  %v34_v44 = vmax.f32 %v24_v42, 1e-10  ;;  %s202_s25 = sshll.u32 %s246_s24, 4  ;;  %s204_s28 = sshll.u32 %s373_s3, 4  ;;  %s203_s25 = int_to_ptr.vmem [resolvable:$true] %s202_s25  ;;  %s205_s28 = int_to_ptr.hbm [resolvable:$true] %s204_s28 }
   0xe   :  { %v50_v31 = vadd.f32 %v41_v24, %v40_v23  ;;  %v53_v34 = vadd.f32 %v43_v26, %v42_v25  ;;  %v48_v47 = vmul.f32 %v38_v21, %v33_v43  ;;  %v82_v4 = vmul.f32 16.0, %v311_v7 }
   0xf   :  { %v56_v45 = vadd.f32 %v45_v38, %v44_v37  ;;  %v59_v46 = vadd.f32 %v47_v40, %v46_v39  ;;  %v49_v48 = vmul.f32 %v39_v22, %v34_v44  ;;  %vm195_vm3 = vcmask 0  }
  0x10   :  { %v63_v49 = vsel %vm62_vm0, %v48_v47, 0.0 }
  0x11   :  { %v64_v50 = vsel %vm62_vm0, %v49_v48, 0.0 }
  0x12   :  { %127 = vrot.lane.b32.xlu0 %v306_v6, %s244_s16  ;;  %96 = vrot.lane.b32.xlu1 %v311_v7, %s244_s16  ;;  %v65_v51 = vadd.f32 %v64_v50, %v63_v49 }
  0x13   :  { %129 = vrot.lane.b32.xlu2 %v316_v8, %s244_s16 }
  0x1a   :  { %131 = vrot.lane.b32.xlu0 %v324_v9, %s244_s16 }
  0x3c   :  { %51 = vadd.xlane.f32.xlu1 %v50_v31  ;;  %54 = vadd.xlane.f32.xlu2 %v53_v34 }
  0x44   :  { %57 = vadd.xlane.f32.xlu0 %v56_v45  ;;  %60 = vadd.xlane.f32.xlu2 %v59_v46 }
  0x4c   :  { %66 = vadd.xlane.f32.xlu0 %v65_v51 }
  0x5d   :  { %v126_v52 = vpop.permute.xlu2 %125 }
  0x65   :  { %v95_v56 = vpop.permute.xlu2 %94 }
  0x66   :  { %v106_v12 = vadd.f32 %v95_v56, %v81_v61 }
  0x6d   :  { %v130_v13 = vpop.permute.xlu2 %129 }
  0x6e   :  { %v141_v15 = vmul.f32 %v130_v13, %v106_v12 }
  0x74   :  { %v93_v53 = vpop.permute.xlu1 %92  ;;  %v89_v54 = vpop.permute.xlu0 %88 }
  0x75   :  { %v103_v58 = vadd.f32 %v89_v54, %v78_v55  ;;  %v105_v14 = vadd.f32 %v93_v53, %v80_v10 }
  0x7c   :  { %v124_v59 = vpop.permute.xlu1 %123  ;;  %v91_v60 = vpop.permute.xlu0 %90 }
  0x7d   :  { %v138_v62 = vmul.f32 %v124_v59, %v103_v58  ;;  %v104_v63 = vadd.f32 %v91_v60, %v79_v57 }
  0x7f   :  { %v139_v11 = vmul.f32 %v126_v52, %v104_v63  ;;  %148 = vrot.lane.b32.xlu1 %v138_v62, %s245_s0 }
  0x81   :  { %150 = vrot.lane.b32.xlu2 %v139_v11, %s245_s0 }
  0x84   :  { %v128_v1 = vpop.permute.xlu0 %127  ;;  %v97_v17 = vpop.permute.xlu1 %96 }
  0x85   :  { %v140_v16 = vmul.f32 %v128_v1, %v105_v14  ;;  %v107_v5 = vadd.f32 %v97_v17, %v82_v4 }
  0x87   :  { %152 = vrot.lane.b32.xlu0 %v140_v16, %s245_s0  ;;  %154 = vrot.lane.b32.xlu1 %v141_v15, %s245_s0 }
  0x8c   :  { %v132_v18 = vpop.permute.xlu0 %131 }
  0x8d   :  { %v142_v19 = vmul.f32 %v132_v18, %v107_v5 }
  0x8f   :  { %156 = vrot.lane.b32.xlu2 %v142_v19, %s245_s0 }
  0xaf   :  { %v55_v0 = vpop.xlane.xlu2 %54  ;;  %v52_v22 = vpop.xlane.xlu1 %51 }
  0xb0   :  { %v69_v23 = vmul.f32 0.03987034, %v55_v0  ;;  %v68_v24 = vmul.f32 0.03987034, %v52_v22 }
  0xb2   :  { %v114_v27 = vmul.f32 %v282_v2, %v69_v23  ;;  %v113_v28 = vmul.f32 %v288_v3, %v68_v24 }
  0xb7   :  { %v61_v20 = vpop.xlane.xlu2 %60  ;;  %v58_v21 = vpop.xlane.xlu0 %57 }
  0xb8   :  { %v71_v31 = vmul.f32 0.03987034, %v61_v20  ;;  %v70_v33 = vmul.f32 0.03987034, %v58_v21 }
  0xba   :  { %v115_v38 = vmul.f32 %v306_v6, %v70_v33  ;;  %v116_v39 = vmul.f32 %v316_v8, %v71_v31 }
  0xbf   :  { %v67_v26 = vpop.xlane.xlu0 %66 }
  0xc0   :  { %v72_v29 = vmul.f32 0.03987034, %v67_v26 }
  0xc2   :  { %v117_v34 = vmul.f32 %v324_v9, %v72_v29 }
  0xdb   :  { %v151_v25 = vpop.permute.xlu2 %150 }
  0xdc   :  { %v164_v32 = vsub.f32 %v114_v27, %v151_v25 }
  0xde   :  { %v169_v37 = vand.u32 2147483647, %v164_v32 }
  0xe0   :  { %v175_v44 = vsel %vm173_vm1, %v169_v37, 0.0 }
  0xe9   :  { %v157_v36 = vpop.permute.xlu2 %156 }
  0xea   :  { %v167_v41 = vsub.f32 %v117_v34, %v157_v36 }
  0xec   :  { %v172_v48 = vand.u32 2147483647, %v167_v41 }
  0xee   :  { %v182_v6 = vsel %vm181_vm2, %v172_v48, 0.0 }
  0xf1   :  { %v149_v7 = vpop.permute.xlu1 %148 }
  0xf2   :  { %v163_v30 = vsub.f32 %v113_v28, %v149_v7 }
  0xf4   :  { %v168_v35 = vand.u32 2147483647, %v163_v30 }
  0xf6   :  { %v174_v3 = vsel %vm173_vm1, %v168_v35, 0.0 }
  0xf7   :  { %v176_v47 = vadd.f32 %v175_v44, %v174_v3 }
  0xf9   :  { %v153_v40 = vpop.permute.xlu0 %152  ;;  %v155_v2 = vpop.permute.xlu1 %154 }
  0xfa   :  { %v165_v42 = vsub.f32 %v115_v38, %v153_v40  ;;  %v166_v43 = vsub.f32 %v116_v39, %v155_v2 }
  0xfc   :  { %v170_v45 = vand.u32 2147483647, %v165_v42  ;;  %v171_v46 = vand.u32 2147483647, %v166_v43 }
  0xfe   :  { %v177_v9 = vsel %vm173_vm1, %v170_v45, 0.0  ;;  %v179_v50 = vsel %vm173_vm1, %v171_v46, 0.0 }
  0xff   :  { %v178_v49 = vadd.f32 %v177_v9, %v176_v47 }
 0x101   :  { %v180_v51 = vadd.f32 %v179_v50, %v178_v49 }
 0x103   :  { %v183_v52 = vadd.f32 %v182_v6, %v180_v51 }
 0x105   :  { %184 = vadd.xlane.f32.xlu1 %v183_v52 }
 0x178   :  { %v185_v8 = vpop.xlane.xlu1 %184 }
 0x179   :  { %v186_v53 = vrot.slane %v185_v8, 4 }
 0x17b   :  { %v187_v54 = vadd.f32 %v186_v53, %v185_v8 }
 0x17d   :  { %v188_v55 = vrot.slane %v187_v54, 2 }
 0x17f   :  { %v189_v56 = vadd.f32 %v188_v55, %v187_v54 }
 0x181   :  { %v190_v57 = vrot.slane %v189_v56, 1 }
 0x183   :  { %v191_v58 = vadd.f32 %v190_v57, %v189_v56 }
 0x185   :  { %213 = vpush %v191_v58 }
 0x1b6   :  { %s214_s29 = spop %213 }
 0x1b7   :  { %v193_v59 = vstv %s214_s29 }
 0x1b8   :  { %v194_v60 = vmul.f32 0.029411765, %v193_v59 }
 0x1ba   :  { %196 = vst.msk [vmem:[#allocation2] sm:$0x1] %vm195_vm3, %v194_v60 }
 0x1bb   :  { %207 = dma.vmem_to_hbm [thread:$0]  %s203_s25, 16, %s205_s28, [#allocation3]  }
 0x1bc   :  { %242 = dma.done.wait [#allocation3], 16  }
 0x1bd   :  { %243 = vsyncadd [#allocation3], 4294967280 }
 0x1be   :  { %212 = vsyncpa [#allocation3], 1 }

</bundles_post_ra>
